<compile_context>
chip_gen: v5e
topology: v5e:2x2
jax: 0.10.0
libtpu: 0.0.40
codegen_flags: <defaults>
</compile_context>

<pallas_src>
import functools
import math

import jax
import jax.numpy as jnp
from jax.experimental import pallas as pl
from jax.experimental.pallas import tpu as pltpu


def _attention_kernel(q_ref, k_ref, wq_ref, bq_ref, wkv_ref, bkv_ref, o_ref, *,
                      bs, n_heads, kq_head_dim, val_head_dim, kq_dim, tau):
    # Load shared weights/biases once; hoisted out of the batch/head loops.
    wq = wq_ref[...]                                    # (in_dim, kq_dim)
    bq = bq_ref[...]                                    # (1, kq_dim)
    wkv = wkv_ref[...]                                  # (in_dim, kq_dim+value_dim)
    bkv = bkv_ref[...]                                  # (1, kq_dim+value_dim)

    scale = 1.0 / (math.sqrt(kq_head_dim) * tau)
    # Contract dim 1 of both operands == q @ k^T without materializing k^T.
    dn = (((1,), (1,)), ((), ()))

    for b in range(bs):                                 # static, small
        q_in = q_ref[b]                                 # (Lq, in_dim)
        k_in = k_ref[b]                                 # (Lk, in_dim)

        # Q projection, and fused K||V projection.
        q_proj = jnp.dot(q_in, wq, preferred_element_type=jnp.float32) + bq
        kv_proj = jnp.dot(k_in, wkv, preferred_element_type=jnp.float32) + bkv
        k_proj = kv_proj[:, :kq_dim]                    # (Lk, kq_dim)
        v_proj = kv_proj[:, kq_dim:]                    # (Lk, value_dim)

        head_outs = []
        for h in range(n_heads):                        # static, small
            qh = q_proj[:, h * kq_head_dim:(h + 1) * kq_head_dim]   # (Lq, hd)
            kh = k_proj[:, h * kq_head_dim:(h + 1) * kq_head_dim]   # (Lk, hd)
            vh = v_proj[:, h * val_head_dim:(h + 1) * val_head_dim] # (Lk, vhd)

            scores = jax.lax.dot_general(
                qh, kh, dimension_numbers=dn,
                preferred_element_type=jnp.float32) * scale          # (Lq, Lk)
            scores = scores - jnp.max(scores, axis=-1, keepdims=True)
            probs = jnp.exp(scores)
            probs = probs / jnp.sum(probs, axis=-1, keepdims=True)   # exact
            head_outs.append(
                jnp.dot(probs, vh, preferred_element_type=jnp.float32))

        out_b = jnp.concatenate(head_outs, axis=-1)     # (Lq, value_dim)
        o_ref[b] = out_b.astype(o_ref.dtype)


def attention_pallas(query, key, params, *, n_heads, tau):
    """query, key: (bs, in_dim, L) channel-first, like the PyTorch module."""
    wq, bq, wk, bk, wv, bv = params
    bs, in_dim, lq = query.shape
    _, _, lk = key.shape
    kq_dim = wq.shape[1]
    value_dim = wv.shape[1]
    kq_head_dim = kq_dim // n_heads
    val_head_dim = value_dim // n_heads

    # Host-side glue: transpose to (bs, L, in_dim).
    q_in = jnp.transpose(query, (0, 2, 1))
    k_in = jnp.transpose(key, (0, 2, 1))

    # Fuse K and V projections (both consume the key input).
    wkv = jnp.concatenate([wk, wv], axis=1)             # (in_dim, kq+value)
    bkv = jnp.concatenate([bk, bv], axis=1)             # (1, kq+value)

    kernel = functools.partial(
        _attention_kernel,
        bs=bs,
        n_heads=n_heads,
        kq_head_dim=kq_head_dim,
        val_head_dim=val_head_dim,
        kq_dim=kq_dim,
        tau=tau,
    )

    full = lambda shape: pl.BlockSpec(shape, lambda i: (0,) * len(shape))

    out = pl.pallas_call(
        kernel,
        out_shape=jax.ShapeDtypeStruct((bs, lq, value_dim), query.dtype),
        grid_spec=pltpu.PrefetchScalarGridSpec(
            num_scalar_prefetch=0,
            grid=(1,),                                  # single invocation
            in_specs=[
                full((bs, lq, in_dim)),                 # query (whole batch)
                full((bs, lk, in_dim)),                 # key   (whole batch)
                full((in_dim, kq_dim)),                 # Wq (pre-transposed)
                full((1, kq_dim)),                      # bq
                full((in_dim, kq_dim + value_dim)),     # Wk || Wv
                full((1, kq_dim + value_dim)),          # bk || bv
            ],
            out_specs=full((bs, lq, value_dim)),
        ),
        compiler_params=pltpu.CompilerParams(
            dimension_semantics=("arbitrary",)),
    )(q_in, k_in, wq, bq, wkv, bkv)

    # (bs, Lq, value_dim) -> (bs, value_dim, Lq)  (matches torch permute(0,2,1))
    return jnp.transpose(out, (0, 2, 1))


def attention_reference(query, key, params, *, n_heads, tau):
    """Pure-JAX reference mirroring the PyTorch forward exactly."""
    wq, bq, wk, bk, wv, bv = params
    bs, in_dim, lq = query.shape
    kq_dim = wq.shape[1]
    value_dim = wv.shape[1]
    hd = kq_dim // n_heads
    vhd = value_dim // n_heads

    q_ = jnp.transpose(query, (0, 2, 1))
    k_ = jnp.transpose(key, (0, 2, 1))

    def reshape(x, head_dim):
        return jnp.transpose(x.reshape(bs, -1, n_heads, head_dim), (0, 2, 1, 3))

    q = reshape(q_ @ wq + bq, hd)                               # (bs, h, Lq, hd)
    k = jnp.transpose(reshape(k_ @ wk + bk, hd), (0, 1, 3, 2))  # (bs, h, hd, Lk)
    v = reshape(k_ @ wv + bv, vhd)                              # (bs, h, Lk, vhd)
    attn = (q @ k) / math.sqrt(hd) / tau
    attn = jax.nn.softmax(attn, axis=-1)
    out = attn @ v                                              # (bs, h, Lq, vhd)
    out = jnp.transpose(out, (0, 2, 1, 3)).reshape(bs, lq, n_heads * vhd)
    return jnp.transpose(out, (0, 2, 1))


if __name__ == "__main__":
    # Config (small, consistent with the module)
    bs, in_dim, L = 2, 8, 16
    key_query_dim, value_dim = 16, 16
    n_heads, tau = 2, 1.0

    root = jax.random.PRNGKey(0)
    k_q, k_k, kp1, kp2, kp3, kp4, kp5, kp6 = jax.random.split(root, 8)

    # Inputs: channel-first (bs, in_dim, L), like the PyTorch module.
    query = jax.random.normal(k_q, (bs, in_dim, L), dtype=jnp.float32)
    key = jax.random.normal(k_k, (bs, in_dim, L), dtype=jnp.float32)

    # Deterministic parameter init (nn.Linear shapes), stored pre-transposed
    # as (in_dim, out_dim) for x @ W; biases as (1, out_dim).
    def linear_init(kw, kb, fan_in, fan_out):
        bound = 1.0 / math.sqrt(fan_in)
        w = jax.random.uniform(kw, (fan_in, fan_out), jnp.float32, -bound, bound)
        b = jax.random.uniform(kb, (1, fan_out), jnp.float32, -bound, bound)
        return w, b

    wq, bq = linear_init(kp1, kp2, in_dim, key_query_dim)
    wk, bk = linear_init(kp3, kp4, in_dim, key_query_dim)
    wv, bv = linear_init(kp5, kp6, in_dim, value_dim)
    params = (wq, bq, wk, bk, wv, bv)

    out = attention_pallas(query, key, params, n_heads=n_heads, tau=tau)
    out = jax.block_until_ready(out)

    # Reference at highest matmul precision (true f32).  Tolerance allows for
    # the fact that the non-kernel path's default f32 matmul precision on TPU
    # may differ from the MXU multi-pass f32 decomposition used in-kernel.
    with jax.default_matmul_precision("highest"):
        ref = jax.block_until_ready(
            attention_reference(query, key, params, n_heads=n_heads, tau=tau))

    assert out.shape == (bs, value_dim, L), out.shape
    assert jnp.allclose(out, ref, atol=1e-2, rtol=1e-2), (
        "mismatch vs reference, max abs diff = %s"
        % float(jnp.max(jnp.abs(out - ref))))

    print("KERNEL_OK")
</pallas_src>

<mosaic_0001>
module attributes {stable_mosaic.version = 11 : i64} {
  func.func @_attention_kernel(%arg0: i32, %arg1: memref<2x16x8xf32, #tpu.memory_space<vmem>>, %arg2: memref<2x16x8xf32, #tpu.memory_space<vmem>>, %arg3: memref<8x16xf32, #tpu.memory_space<vmem>>, %arg4: memref<1x16xf32, #tpu.memory_space<vmem>>, %arg5: memref<8x32xf32, #tpu.memory_space<vmem>>, %arg6: memref<1x32xf32, #tpu.memory_space<vmem>>, %arg7: memref<2x16x16xf32, #tpu.memory_space<vmem>>) attributes {dimension_semantics = [#tpu.dimension_semantics<arbitrary>], iteration_bounds = array<i64: 1>, scalar_prefetch = 0 : i64, scratch_operands = 0 : i64, tpu.core_type = #tpu.core_type<tc>, window_params = [{pipeline_mode = #tpu.pipeline_mode<synchronous>, transform_indices = @transform_0, window_bounds = array<i64: 2, 16, 8>}, {pipeline_mode = #tpu.pipeline_mode<synchronous>, transform_indices = @transform_1, window_bounds = array<i64: 2, 16, 8>}, {pipeline_mode = #tpu.pipeline_mode<synchronous>, transform_indices = @transform_2, window_bounds = array<i64: 8, 16>}, {pipeline_mode = #tpu.pipeline_mode<synchronous>, transform_indices = @transform_3, window_bounds = array<i64: 1, 16>}, {pipeline_mode = #tpu.pipeline_mode<synchronous>, transform_indices = @transform_4, window_bounds = array<i64: 8, 32>}, {pipeline_mode = #tpu.pipeline_mode<synchronous>, transform_indices = @transform_5, window_bounds = array<i64: 1, 32>}, {pipeline_mode = #tpu.pipeline_mode<synchronous>, transform_indices = @transform_6, window_bounds = array<i64: 2, 16, 16>}]} {
    %c0 = arith.constant 0 : index
    %c0_0 = arith.constant 0 : index
    %0 = vector.load %arg3[%c0, %c0_0] : memref<8x16xf32, #tpu.memory_space<vmem>>, vector<8x16xf32>
    %c0_1 = arith.constant 0 : index
    %c0_2 = arith.constant 0 : index
    %1 = vector.load %arg4[%c0_1, %c0_2] : memref<1x16xf32, #tpu.memory_space<vmem>>, vector<1x16xf32>
    %c0_3 = arith.constant 0 : index
    %c0_4 = arith.constant 0 : index
    %2 = vector.load %arg5[%c0_3, %c0_4] : memref<8x32xf32, #tpu.memory_space<vmem>>, vector<8x32xf32>
    %c0_5 = arith.constant 0 : index
    %c0_6 = arith.constant 0 : index
    %3 = vector.load %arg6[%c0_5, %c0_6] : memref<1x32xf32, #tpu.memory_space<vmem>>, vector<1x32xf32>
    %c0_7 = arith.constant 0 : index
    %c0_8 = arith.constant 0 : index
    %c0_9 = arith.constant 0 : index
    %4 = vector.load %arg1[%c0_7, %c0_8, %c0_9] : memref<2x16x8xf32, #tpu.memory_space<vmem>>, vector<1x16x8xf32>
    %5 = vector.shape_cast %4 : vector<1x16x8xf32> to vector<16x8xf32>
    %c0_10 = arith.constant 0 : index
    %c0_11 = arith.constant 0 : index
    %c0_12 = arith.constant 0 : index
    %6 = vector.load %arg2[%c0_10, %c0_11, %c0_12] : memref<2x16x8xf32, #tpu.memory_space<vmem>>, vector<1x16x8xf32>
    %7 = vector.shape_cast %6 : vector<1x16x8xf32> to vector<16x8xf32>
    %cst = arith.constant dense<0.000000e+00> : vector<16x16xf32>
    %8 = tpu.matmul %5, %0, %cst {dimension_numbers = #tpu.dot_dimension_numbers<[1], [0], [0], [1], [0, 0, 1, 1], [], []>} : vector<16x8xf32>, vector<8x16xf32>, vector<16x16xf32> -> vector<16x16xf32>
    %9 = vector.broadcast %1 : vector<1x16xf32> to vector<16x16xf32>
    %10 = arith.addf %8, %9 : vector<16x16xf32>
    %cst_13 = arith.constant dense<0.000000e+00> : vector<16x32xf32>
    %11 = tpu.matmul %7, %2, %cst_13 {dimension_numbers = #tpu.dot_dimension_numbers<[1], [0], [0], [1], [0, 0, 1, 1], [], []>} : vector<16x8xf32>, vector<8x32xf32>, vector<16x32xf32> -> vector<16x32xf32>
    %12 = vector.broadcast %3 : vector<1x32xf32> to vector<16x32xf32>
    %13 = arith.addf %11, %12 : vector<16x32xf32>
    %14 = vector.extract_strided_slice %13 {offsets = [0, 0], sizes = [16, 16], strides = [1, 1]} : vector<16x32xf32> to vector<16x16xf32>
    %15 = vector.extract_strided_slice %13 {offsets = [0, 16], sizes = [16, 16], strides = [1, 1]} : vector<16x32xf32> to vector<16x16xf32>
    %16 = vector.extract_strided_slice %10 {offsets = [0, 0], sizes = [16, 8], strides = [1, 1]} : vector<16x16xf32> to vector<16x8xf32>
    %17 = vector.extract_strided_slice %14 {offsets = [0, 0], sizes = [16, 8], strides = [1, 1]} : vector<16x16xf32> to vector<16x8xf32>
    %18 = vector.extract_strided_slice %15 {offsets = [0, 0], sizes = [16, 8], strides = [1, 1]} : vector<16x16xf32> to vector<16x8xf32>
    %cst_14 = arith.constant dense<0.000000e+00> : vector<16x16xf32>
    %19 = tpu.matmul %16, %17, %cst_14 {dimension_numbers = #tpu.dot_dimension_numbers<[1], [1], [0], [0], [0, 0, 1, 0], [], []>} : vector<16x8xf32>, vector<16x8xf32>, vector<16x16xf32> -> vector<16x16xf32>
    %cst_15 = arith.constant 0.353553385 : f32
    %20 = vector.broadcast %cst_15 : f32 to vector<16x16xf32>
    %21 = arith.mulf %19, %20 : vector<16x16xf32>
    %cst_16 = arith.constant dense<0xFF800000> : vector<16xf32>
    %22 = vector.multi_reduction <maximumf>, %21, %cst_16 [1] : vector<16x16xf32> to vector<16xf32>
    %23 = vector.shape_cast %22 : vector<16xf32> to vector<16x1xf32>
    %24 = vector.broadcast %23 : vector<16x1xf32> to vector<16x16xf32>
    %25 = arith.subf %21, %24 : vector<16x16xf32>
    %26 = math.exp %25 : vector<16x16xf32>
    %cst_17 = arith.constant dense<0.000000e+00> : vector<16xf32>
    %27 = vector.multi_reduction <add>, %26, %cst_17 [1] : vector<16x16xf32> to vector<16xf32>
    %28 = vector.shape_cast %27 : vector<16xf32> to vector<16x1xf32>
    %29 = vector.broadcast %28 : vector<16x1xf32> to vector<16x16xf32>
    %30 = arith.divf %26, %29 : vector<16x16xf32>
    %cst_18 = arith.constant dense<0.000000e+00> : vector<16x8xf32>
    %31 = tpu.matmul %30, %18, %cst_18 {dimension_numbers = #tpu.dot_dimension_numbers<[1], [0], [0], [1], [0, 0, 1, 1], [], []>} : vector<16x16xf32>, vector<16x8xf32>, vector<16x8xf32> -> vector<16x8xf32>
    %32 = vector.extract_strided_slice %10 {offsets = [0, 8], sizes = [16, 8], strides = [1, 1]} : vector<16x16xf32> to vector<16x8xf32>
    %33 = vector.extract_strided_slice %14 {offsets = [0, 8], sizes = [16, 8], strides = [1, 1]} : vector<16x16xf32> to vector<16x8xf32>
    %34 = vector.extract_strided_slice %15 {offsets = [0, 8], sizes = [16, 8], strides = [1, 1]} : vector<16x16xf32> to vector<16x8xf32>
    %cst_19 = arith.constant dense<0.000000e+00> : vector<16x16xf32>
    %35 = tpu.matmul %32, %33, %cst_19 {dimension_numbers = #tpu.dot_dimension_numbers<[1], [1], [0], [0], [0, 0, 1, 0], [], []>} : vector<16x8xf32>, vector<16x8xf32>, vector<16x16xf32> -> vector<16x16xf32>
    %cst_20 = arith.constant 0.353553385 : f32
    %36 = vector.broadcast %cst_20 : f32 to vector<16x16xf32>
    %37 = arith.mulf %35, %36 : vector<16x16xf32>
    %cst_21 = arith.constant dense<0xFF800000> : vector<16xf32>
    %38 = vector.multi_reduction <maximumf>, %37, %cst_21 [1] : vector<16x16xf32> to vector<16xf32>
    %39 = vector.shape_cast %38 : vector<16xf32> to vector<16x1xf32>
    %40 = vector.broadcast %39 : vector<16x1xf32> to vector<16x16xf32>
    %41 = arith.subf %37, %40 : vector<16x16xf32>
    %42 = math.exp %41 : vector<16x16xf32>
    %cst_22 = arith.constant dense<0.000000e+00> : vector<16xf32>
    %43 = vector.multi_reduction <add>, %42, %cst_22 [1] : vector<16x16xf32> to vector<16xf32>
    %44 = vector.shape_cast %43 : vector<16xf32> to vector<16x1xf32>
    %45 = vector.broadcast %44 : vector<16x1xf32> to vector<16x16xf32>
    %46 = arith.divf %42, %45 : vector<16x16xf32>
    %cst_23 = arith.constant dense<0.000000e+00> : vector<16x8xf32>
    %47 = tpu.matmul %46, %34, %cst_23 {dimension_numbers = #tpu.dot_dimension_numbers<[1], [0], [0], [1], [0, 0, 1, 1], [], []>} : vector<16x16xf32>, vector<16x8xf32>, vector<16x8xf32> -> vector<16x8xf32>
    %48 = tpu.concatenate %31, %47 in 1 : vector<16x8xf32>, vector<16x8xf32> -> vector<16x16xf32>
    %c0_24 = arith.constant 0 : index
    %c0_25 = arith.constant 0 : index
    %c0_26 = arith.constant 0 : index
    %49 = vector.load %arg7[%c0_24, %c0_25, %c0_26] : memref<2x16x16xf32, #tpu.memory_space<vmem>>, vector<1x16x16xf32>
    %50 = vector.shape_cast %49 : vector<1x16x16xf32> to vector<16x16xf32>
    %51 = vector.shape_cast %48 : vector<16x16xf32> to vector<1x16x16xf32>
    tpu.vector_store %arg7[%c0_24, %c0_25, %c0_26], %51 {strides = array<i32>} : memref<2x16x16xf32, #tpu.memory_space<vmem>>, vector<1x16x16xf32>,
    %c1 = arith.constant 1 : index
    %c0_27 = arith.constant 0 : index
    %c0_28 = arith.constant 0 : index
    %52 = vector.load %arg1[%c1, %c0_27, %c0_28] : memref<2x16x8xf32, #tpu.memory_space<vmem>>, vector<1x16x8xf32>
    %53 = vector.shape_cast %52 : vector<1x16x8xf32> to vector<16x8xf32>
    %c1_29 = arith.constant 1 : index
    %c0_30 = arith.constant 0 : index
    %c0_31 = arith.constant 0 : index
    %54 = vector.load %arg2[%c1_29, %c0_30, %c0_31] : memref<2x16x8xf32, #tpu.memory_space<vmem>>, vector<1x16x8xf32>
    %55 = vector.shape_cast %54 : vector<1x16x8xf32> to vector<16x8xf32>
    %cst_32 = arith.constant dense<0.000000e+00> : vector<16x16xf32>
    %56 = tpu.matmul %53, %0, %cst_32 {dimension_numbers = #tpu.dot_dimension_numbers<[1], [0], [0], [1], [0, 0, 1, 1], [], []>} : vector<16x8xf32>, vector<8x16xf32>, vector<16x16xf32> -> vector<16x16xf32>
    %57 = vector.broadcast %1 : vector<1x16xf32> to vector<16x16xf32>
    %58 = arith.addf %56, %57 : vector<16x16xf32>
    %cst_33 = arith.constant dense<0.000000e+00> : vector<16x32xf32>
    %59 = tpu.matmul %55, %2, %cst_33 {dimension_numbers = #tpu.dot_dimension_numbers<[1], [0], [0], [1], [0, 0, 1, 1], [], []>} : vector<16x8xf32>, vector<8x32xf32>, vector<16x32xf32> -> vector<16x32xf32>
    %60 = vector.broadcast %3 : vector<1x32xf32> to vector<16x32xf32>
    %61 = arith.addf %59, %60 : vector<16x32xf32>
    %62 = vector.extract_strided_slice %61 {offsets = [0, 0], sizes = [16, 16], strides = [1, 1]} : vector<16x32xf32> to vector<16x16xf32>
    %63 = vector.extract_strided_slice %61 {offsets = [0, 16], sizes = [16, 16], strides = [1, 1]} : vector<16x32xf32> to vector<16x16xf32>
    %64 = vector.extract_strided_slice %58 {offsets = [0, 0], sizes = [16, 8], strides = [1, 1]} : vector<16x16xf32> to vector<16x8xf32>
    %65 = vector.extract_strided_slice %62 {offsets = [0, 0], sizes = [16, 8], strides = [1, 1]} : vector<16x16xf32> to vector<16x8xf32>
    %66 = vector.extract_strided_slice %63 {offsets = [0, 0], sizes = [16, 8], strides = [1, 1]} : vector<16x16xf32> to vector<16x8xf32>
    %cst_34 = arith.constant dense<0.000000e+00> : vector<16x16xf32>
    %67 = tpu.matmul %64, %65, %cst_34 {dimension_numbers = #tpu.dot_dimension_numbers<[1], [1], [0], [0], [0, 0, 1, 0], [], []>} : vector<16x8xf32>, vector<16x8xf32>, vector<16x16xf32> -> vector<16x16xf32>
    %cst_35 = arith.constant 0.353553385 : f32
    %68 = vector.broadcast %cst_35 : f32 to vector<16x16xf32>
    %69 = arith.mulf %67, %68 : vector<16x16xf32>
    %cst_36 = arith.constant dense<0xFF800000> : vector<16xf32>
    %70 = vector.multi_reduction <maximumf>, %69, %cst_36 [1] : vector<16x16xf32> to vector<16xf32>
    %71 = vector.shape_cast %70 : vector<16xf32> to vector<16x1xf32>
    %72 = vector.broadcast %71 : vector<16x1xf32> to vector<16x16xf32>
    %73 = arith.subf %69, %72 : vector<16x16xf32>
    %74 = math.exp %73 : vector<16x16xf32>
    %cst_37 = arith.constant dense<0.000000e+00> : vector<16xf32>
    %75 = vector.multi_reduction <add>, %74, %cst_37 [1] : vector<16x16xf32> to vector<16xf32>
    %76 = vector.shape_cast %75 : vector<16xf32> to vector<16x1xf32>
    %77 = vector.broadcast %76 : vector<16x1xf32> to vector<16x16xf32>
    %78 = arith.divf %74, %77 : vector<16x16xf32>
    %cst_38 = arith.constant dense<0.000000e+00> : vector<16x8xf32>
    %79 = tpu.matmul %78, %66, %cst_38 {dimension_numbers = #tpu.dot_dimension_numbers<[1], [0], [0], [1], [0, 0, 1, 1], [], []>} : vector<16x16xf32>, vector<16x8xf32>, vector<16x8xf32> -> vector<16x8xf32>
    %80 = vector.extract_strided_slice %58 {offsets = [0, 8], sizes = [16, 8], strides = [1, 1]} : vector<16x16xf32> to vector<16x8xf32>
    %81 = vector.extract_strided_slice %62 {offsets = [0, 8], sizes = [16, 8], strides = [1, 1]} : vector<16x16xf32> to vector<16x8xf32>
    %82 = vector.extract_strided_slice %63 {offsets = [0, 8], sizes = [16, 8], strides = [1, 1]} : vector<16x16xf32> to vector<16x8xf32>
    %cst_39 = arith.constant dense<0.000000e+00> : vector<16x16xf32>
    %83 = tpu.matmul %80, %81, %cst_39 {dimension_numbers = #tpu.dot_dimension_numbers<[1], [1], [0], [0], [0, 0, 1, 0], [], []>} : vector<16x8xf32>, vector<16x8xf32>, vector<16x16xf32> -> vector<16x16xf32>
    %cst_40 = arith.constant 0.353553385 : f32
    %84 = vector.broadcast %cst_40 : f32 to vector<16x16xf32>
    %85 = arith.mulf %83, %84 : vector<16x16xf32>
    %cst_41 = arith.constant dense<0xFF800000> : vector<16xf32>
    %86 = vector.multi_reduction <maximumf>, %85, %cst_41 [1] : vector<16x16xf32> to vector<16xf32>
    %87 = vector.shape_cast %86 : vector<16xf32> to vector<16x1xf32>
    %88 = vector.broadcast %87 : vector<16x1xf32> to vector<16x16xf32>
    %89 = arith.subf %85, %88 : vector<16x16xf32>
    %90 = math.exp %89 : vector<16x16xf32>
    %cst_42 = arith.constant dense<0.000000e+00> : vector<16xf32>
    %91 = vector.multi_reduction <add>, %90, %cst_42 [1] : vector<16x16xf32> to vector<16xf32>
    %92 = vector.shape_cast %91 : vector<16xf32> to vector<16x1xf32>
    %93 = vector.broadcast %92 : vector<16x1xf32> to vector<16x16xf32>
    %94 = arith.divf %90, %93 : vector<16x16xf32>
    %cst_43 = arith.constant dense<0.000000e+00> : vector<16x8xf32>
    %95 = tpu.matmul %94, %82, %cst_43 {dimension_numbers = #tpu.dot_dimension_numbers<[1], [0], [0], [1], [0, 0, 1, 1], [], []>} : vector<16x16xf32>, vector<16x8xf32>, vector<16x8xf32> -> vector<16x8xf32>
    %96 = tpu.concatenate %79, %95 in 1 : vector<16x8xf32>, vector<16x8xf32> -> vector<16x16xf32>
    %c1_44 = arith.constant 1 : index
    %c0_45 = arith.constant 0 : index
    %c0_46 = arith.constant 0 : index
    %97 = vector.load %arg7[%c1_44, %c0_45, %c0_46] : memref<2x16x16xf32, #tpu.memory_space<vmem>>, vector<1x16x16xf32>
    %98 = vector.shape_cast %97 : vector<1x16x16xf32> to vector<16x16xf32>
    %99 = vector.shape_cast %96 : vector<16x16xf32> to vector<1x16x16xf32>
    tpu.vector_store %arg7[%c1_44, %c0_45, %c0_46], %99 {strides = array<i32>} : memref<2x16x16xf32, #tpu.memory_space<vmem>>, vector<1x16x16xf32>,
    return
  }
  func.func @transform_0(%arg0: i32) -> (i32, i32, i32) {
    %c0_i32 = arith.constant 0 : i32
    %c0_i32_0 = arith.constant 0 : i32
    %c0_i32_1 = arith.constant 0 : i32
    %c0_i32_2 = arith.constant 0 : i32
    return %c0_i32, %c0_i32_0, %c0_i32_1 : i32, i32, i32
  }
  func.func @transform_1(%arg0: i32) -> (i32, i32, i32) {
    %c0_i32 = arith.constant 0 : i32
    %c0_i32_0 = arith.constant 0 : i32
    %c0_i32_1 = arith.constant 0 : i32
    %c0_i32_2 = arith.constant 0 : i32
    return %c0_i32, %c0_i32_0, %c0_i32_1 : i32, i32, i32
  }
  func.func @transform_2(%arg0: i32) -> (i32, i32) {
    %c0_i32 = arith.constant 0 : i32
    %c0_i32_0 = arith.constant 0 : i32
    %c0_i32_1 = arith.constant 0 : i32
    return %c0_i32, %c0_i32_0 : i32, i32
  }
  func.func @transform_3(%arg0: i32) -> (i32, i32) {
    %c0_i32 = arith.constant 0 : i32
    %c0_i32_0 = arith.constant 0 : i32
    %c0_i32_1 = arith.constant 0 : i32
    return %c0_i32, %c0_i32_0 : i32, i32
  }
  func.func @transform_4(%arg0: i32) -> (i32, i32) {
    %c0_i32 = arith.constant 0 : i32
    %c0_i32_0 = arith.constant 0 : i32
    %c0_i32_1 = arith.constant 0 : i32
    return %c0_i32, %c0_i32_0 : i32, i32
  }
  func.func @transform_5(%arg0: i32) -> (i32, i32) {
    %c0_i32 = arith.constant 0 : i32
    %c0_i32_0 = arith.constant 0 : i32
    %c0_i32_1 = arith.constant 0 : i32
    return %c0_i32, %c0_i32_0 : i32, i32
  }
  func.func @transform_6(%arg0: i32) -> (i32, i32, i32) {
    %c0_i32 = arith.constant 0 : i32
    %c0_i32_0 = arith.constant 0 : i32
    %c0_i32_1 = arith.constant 0 : i32
    %c0_i32_2 = arith.constant 0 : i32
    return %c0_i32, %c0_i32_0, %c0_i32_1 : i32, i32, i32
  }
}

</mosaic_0001>

<bundles_post_ra>
// kernel: tpu_custom_call.1
= control target key start
LH: loop header
LB: loop body
LE: loop exit
PB: predicated region body
PF: predicated region fallthrough
CT: control target
= control target key end

     0   :  { %vm35_vm0 = vcmask 64512   ;;  %s1047_s0 = inlined_call_operand.vmem [shape: f32[2,16,8], index: 0, kind: input, shape index: {}]   ;;  %s1048_s1 = inlined_call_operand.vmem [shape: f32[2,16,8], index: 1, kind: input, shape index: {}]   ;;  %s1049_s2 = inlined_call_operand.vmem [shape: f32[8,16], index: 2, kind: input, shape index: {}]   ;;  %s1050_s3 = inlined_call_operand.vmem [shape: f32[1,16], index: 3, kind: input, shape index: {}]   ;;  %s1051_s4 = inlined_call_operand.vmem [shape: f32[8,32], index: 4, kind: input, shape index: {}]   ;;  %s1052_s5 = inlined_call_operand.vmem [shape: f32[1,32], index: 5, kind: input, shape index: {}]   ;;  %s1053_s6 = inlined_call_operand.hbm [shape: f32[2,16,16], index: 6, kind: output, shape index: {}]  }
   0x1   :  { %v26_v0 = vld [vmem:[%s1051_s4] sm:$0xff] }
   0x2   :  { %v30_v1 = vld [vmem:[%s1048_s1] sm:$0xff]  ;;  %89 = vmatpush.msra.mxu1 %v26_v0 }
   0x3   :  { %v24_v2 = vld [vmem:[%s1049_s2] sm:$0xff]  ;;  %695 = vmatmul.msk.f32.vlgmr.msra.gmra.mxu1 %vm35_vm0, %v30_v1 }
   0x4   :  { %v28_v3 = vld [vmem:[%s1047_s0] sm:$0xff]  ;;  %57 = vmatpush.msra.mxu0 %v24_v2 }
   0x5   :  { %693 = vmatmul.msk.f32.vlgmr.msra.gmra.mxu0 %vm35_vm0, %v28_v3 }
   0x6   :  { %11 = vsyncpa [#allocation3], 0  ;;  %v31_v4 = vld [vmem:[%s1048_s1 + $0x8] sm:$0xff]  ;;  %v755_v7 = vld [vmem:[%s1052_s5] ss:$0 sm:$0xff]  ;;  %s815_s11 = smov 112  }
   0x7   :  { %v29_v5 = vld [vmem:[%s1047_s0 + $0x8] sm:$0xff]  ;;  %v886_v12 = vld [vmem:[%s1050_s3] ss:$0 sm:$0xff]  ;;  %v711_v17 = vld [vmem:[%s1048_s1 + $0x10] sm:$0xff]  ;;  %vm134_vm1 = vcmask 130048   ;;  %s818_s18 = smov 8  }
   0x8   :  { %v712_v18 = vld [vmem:[%s1048_s1 + $0x18] sm:$0xff]  ;;  %s816_s1 = smov 120   ;;  %s681_s21 = sshll.u32 %s1053_s6, 4  ;;  %s682_s21 = int_to_ptr.hbm [resolvable:$true] %s681_s21 }
   0x9   :  { %s819_s22 = smov [#allocation2]   ;;  %s820_s24 = smov 128  }
   0xa   :  { %s679_s23 = sshll.u32 %s819_s22, 4  ;;  %s680_s23 = int_to_ptr.vmem [resolvable:$true] %s679_s23 }
   0xb   :  { %696 = vmatmul.msk.f32.gmra.mxu1 %vm35_vm0, %v31_v4 }
   0xd   :  { %694 = vmatmul.msk.f32.gmra.mxu0 %vm35_vm0, %v29_v5  ;;  %v709_v5 = vld [vmem:[%s1047_s0 + $0x10] sm:$0xff] }
  0x80   :  { %v91_v6 = vpop.f32.mrf.mxu1 }
  0x81   :  { %v881_v9 = vadd.f32 %v755_v7, %v91_v6  ;;  %v710_v6 = vld [vmem:[%s1047_s0 + $0x18] sm:$0xff]  ;;  %s817_s0 = smov 104  }
  0x82   :  { %v59_v11 = vpop.f32.mrf.mxu0 }
  0x83   :  { %v60_v14 = vadd.f32 %v886_v12, %v59_v11 }
  0x88   :  { %v94_v8 = vpop.f32.mrf.mxu1 }
  0x89   :  { %v95_v10 = vadd.f32 %v755_v7, %v94_v8 }
  0x8a   :  { %v62_v15 = vpop.f32.mrf.mxu0 }
  0x8b   :  { %697 = vmatpush.xpose.msk.msra.mxu2 %vm35_vm0, %v95_v10  ;;  %v890_v13 = vpack.i.bf16 %v881_v9, %v95_v10  ;;  %v899_v16 = vadd.f32 %v886_v12, %v62_v15 }
  0x8d   :  { %736 = vrot.lane.b32.xlu2 %v890_v13, %s815_s11 }
  0x8f   :  { %698 = vmatpush.xpose.msk.msra.mxu2 %vm35_vm0, %v881_v9 }
  0x92   :  { %699 = vmatmul.msk.f32.vlgmr.msra.gmra.mxu2 %vm35_vm0, %v60_v14 }
  0x93   :  { %410 = vmatpush.msrb.mxu2 %v26_v0 }
  0x9a   :  { %700 = vmatmul.msk.f32.gmra.mxu2 %vm35_vm0, %v899_v16 }
  0xa2   :  { %715 = vmatmul.msk.f32.vlgmr.msrb.gmra.mxu2 %vm35_vm0, %v711_v17 }
  0xaa   :  { %716 = vmatmul.msk.f32.gmra.mxu2 %vm35_vm0, %v712_v18 }
  0xe7   :  { %v737_v19 = vpop.permute.xlu2 %736 }
  0xe8   :  { %v738_v20 = vunpack.i.l.bf16 %v737_v19  ;;  %v739_v21 = vunpack.i.h.bf16 %v737_v19 }
  0xea   :  { %209 = vmatpush.msra.mxu3 %v738_v20 }
  0xec   :  { %210 = vmatpush.msra.mxu3 %v739_v21 }
  0xee   :  { %381 = vmatpush.msrb.mxu3 %v24_v2 }
 0x115   :  { %v126_v22 = vpop.f32.mrf.mxu2 }
 0x116   :  { %v132_v23 = vmul.f32 0.35355338, %v126_v22 }
 0x118   :  { %v135_v24 = vsel %vm134_vm1, %v132_v23, -inf }
 0x119   :  { %136 = vmax.xlane.f32.xlu0 %v135_v24 }
 0x11d   :  { %v129_v25 = vpop.f32.mrf.mxu2 }
 0x11e   :  { %v133_v26 = vmul.f32 0.35355338, %v129_v25 }
 0x120   :  { %v138_v27 = vsel %vm134_vm1, %v133_v26, -inf }
 0x121   :  { %139 = vmax.xlane.f32.xlu0 %v138_v27 }
 0x125   :  { %v412_v28 = vpop.f32.mrf.mxu2 }
 0x126   :  { %v917_v31 = vadd.f32 %v755_v7, %v412_v28 }
 0x12d   :  { %v415_v29 = vpop.f32.mrf.mxu2 }
 0x12e   :  { %v913_v30 = vadd.f32 %v755_v7, %v415_v29 }
 0x130   :  { %544 = vrot.lane.b32.xlu2 %v913_v30, %s816_s1 }
 0x135   :  { %542 = vrot.lane.b32.xlu0 %v917_v31, %s816_s1 }
 0x138   :  { %224 = vrot.lane.b32.xlu2 %v95_v10, %s816_s1 }
 0x13d   :  { %218 = vrot.lane.b32.xlu0 %v60_v14, %s816_s1 }
 0x18a   :  { %v545_v32 = vpop.permute.xlu2 %544 }
 0x18c   :  { %v137_v33 = vpop.xlane.xlu0 %136 }
 0x18d   :  { %v141_v34 = vsub.f32 %v132_v23, %v137_v33 }
 0x18f   :  { %v143_v35 = vmul.f32 1.442695, %v141_v34 }
 0x191   :  { %757 = vpow2.f32 %v143_v35 }
 0x192   :  { %v225_v36 = vpop.permute.xlu2 %224 }
 0x193   :  { %703 = vmatpush.xpose.msk.msrb.mxu0 %vm35_vm0, %v225_v36 }
 0x194   :  { %v140_v37 = vpop.xlane.xlu0 %139 }
 0x195   :  { %v142_v38 = vsub.f32 %v133_v26, %v140_v37 }
 0x197   :  { %v758_v39 = vpop.eup %757  ;;  %v145_v40 = vmul.f32 1.442695, %v142_v38 }
 0x198   :  { %v147_v41 = vsel %vm134_vm1, %v758_v39, 0.0 }
 0x199   :  { %759 = vpow2.f32 %v145_v40  ;;  %148 = vadd.xlane.f32.xlu1 %v147_v41 }
 0x19f   :  { %v760_v42 = vpop.eup %759 }
 0x1a0   :  { %v150_v43 = vsel %vm134_vm1, %v760_v42, 0.0 }
 0x1a1   :  { %151 = vadd.xlane.f32.xlu1 %v150_v43 }
 0x1a7   :  { %v543_v1 = vpop.permute.xlu0 %542 }
 0x1af   :  { %v219_v19 = vpop.permute.xlu0 %218 }
 0x20c   :  { %v149_v44 = vpop.xlane.xlu1 %148 }
 0x20d   :  { %761 = vrcp.f32 %v149_v44  ;;  %v164_v49 = vand.u32 2147483648, %v149_v44  ;;  %v162_v51 = vand.u32 2147483647, %v149_v44  ;;  %vm158_vm3 = vweird.f32 %v149_v44 }
 0x20f   :  { %v165_v54 = vor.u32 1.1754944e-38, %v164_v49  ;;  %vm163_vm5 = vcmp.eq.f32.partialorder %v162_v51, 8.507059e+37 }
 0x213   :  { %v762_v45 = vpop.eup %761 }
 0x214   :  { %v154_v46 = vmul.f32 %v762_v45, %v149_v44  ;;  %v152_v47 = vpop.xlane.xlu1 %151  ;;  %vm159_vm2 = vweird.f32 %v762_v45 }
 0x215   :  { %763 = vrcp.f32 %v152_v47  ;;  %vm160_vm4 = vmor %vm158_vm3, %vm159_vm2  ;;  %v179_v60 = vand.u32 2147483648, %v152_v47  ;;  %v177_v62 = vand.u32 2147483647, %v152_v47  ;;  %vm173_vm7 = vweird.f32 %v152_v47 }
 0x216   :  { %v155_v48 = vsub.f32 1.0, %v154_v46 }
 0x217   :  { %v180_v0 = vor.u32 1.1754944e-38, %v179_v60  ;;  %vm178_vm9 = vcmp.eq.f32.partialorder %v177_v62, 8.507059e+37 }
 0x218   :  { %v156_v50 = vmul.f32 %v762_v45, %v155_v48 }
 0x21a   :  { %v157_v52 = vadd.f32 %v762_v45, %v156_v50 }
 0x21b   :  { %v764_v53 = vpop.eup %763 }
 0x21c   :  { %v169_v55 = vmul.f32 %v764_v53, %v152_v47  ;;  %v161_v56 = vsel %vm160_vm4, %v762_v45, %v157_v52  ;;  %vm174_vm6 = vweird.f32 %v764_v53 }
 0x21d   :  { %v166_v57 = vsel %vm163_vm5, %v165_v54, %v161_v56  ;;  %vm175_vm8 = vmor %vm173_vm7, %vm174_vm6 }
 0x21e   :  { %v170_v58 = vsub.f32 1.0, %v169_v55  ;;  %v167_v59 = vmul.f32 %v758_v39, %v166_v57 }
 0x220   :  { %v171_v61 = vmul.f32 %v764_v53, %v170_v58  ;;  %701 = vmatmul.msk.f32.vlgmr.msra.gmra.mxu3 %vm134_vm1, %v167_v59 }
 0x221   :  { %723 = vmatpush.xpose.msk.msra.mxu3 %vm35_vm0, %v545_v32 }
 0x222   :  { %v172_v63 = vadd.f32 %v764_v53, %v171_v61 }
 0x224   :  { %v176_v2 = vsel %vm175_vm8, %v764_v53, %v172_v63  ;;  %v740_v63 = vpack.i.bf16 %v917_v31, %v913_v30 }
 0x225   :  { %v181_v3 = vsel %vm178_vm9, %v180_v0, %v176_v2  ;;  %724 = vmatpush.xpose.msk.msra.mxu3 %vm35_vm0, %v543_v1 }
 0x226   :  { %v182_v4 = vmul.f32 %v760_v42, %v181_v3 }
 0x228   :  { %702 = vmatmul.msk.f32.gmra.mxu3 %vm134_vm1, %v182_v4 }
 0x230   :  { %713 = vmatmul.msk.f32.vlgmr.msrb.gmra.mxu3 %vm35_vm0, %v709_v5 }
 0x238   :  { %714 = vmatmul.msk.f32.gmra.mxu3 %vm35_vm0, %v710_v6 }
 0x2a3   :  { %v938_v7 = vpop.f32.mrf.mxu3 }
 0x2ab   :  { %v940_v8 = vpop.f32.mrf.mxu3 }
 0x2b3   :  { %v383_v10 = vpop.f32.mrf.mxu3 }
 0x2b4   :  { %v384_v11 = vadd.f32 %v886_v12, %v383_v10 }
 0x2b6   :  { %538 = vrot.lane.b32.xlu1 %v384_v11, %s816_s1 }
 0x2bb   :  { %v386_v14 = vpop.f32.mrf.mxu3 }
 0x2bc   :  { %v387_v15 = vadd.f32 %v886_v12, %v386_v14 }
 0x2be   :  { %540 = vrot.lane.b32.xlu2 %v387_v15, %s816_s1 }
 0x2c6   :  { %222 = vrot.lane.b32.xlu2 %v881_v9, %s816_s1 }
 0x2ce   :  { %220 = vrot.lane.b32.xlu2 %v899_v16, %s816_s1 }
 0x318   :  { %v541_v17 = vpop.permute.xlu2 %540 }
 0x320   :  { %v223_v18 = vpop.permute.xlu2 %222 }
 0x321   :  { %704 = vmatpush.xpose.msk.msrb.mxu0 %vm35_vm0, %v223_v18 }
 0x324   :  { %705 = vmatmul.msk.f32.vlgmr.msrb.gmra.mxu0 %vm35_vm0, %v219_v19 }
 0x325   :  { %717 = vmatpush.xpose.msk.msra.mxu0 %vm35_vm0, %v913_v30 }
 0x328   :  { %v539_v12 = vpop.permute.xlu1 %538  ;;  %v221_v9 = vpop.permute.xlu2 %220 }
 0x329   :  { %718 = vmatpush.xpose.msk.msra.mxu0 %vm35_vm0, %v917_v31  ;;  %725 = vmatmul.msk.f32.vlgmr.msra.gmra.mxu3 %vm35_vm0, %v539_v12 }
 0x32c   :  { %706 = vmatmul.msk.f32.gmra.mxu0 %vm35_vm0, %v221_v9 }
 0x331   :  { %726 = vmatmul.msk.f32.gmra.mxu3 %vm35_vm0, %v541_v17 }
 0x334   :  { %719 = vmatmul.msk.f32.vlgmr.msra.gmra.mxu0 %vm35_vm0, %v384_v11 }
 0x33c   :  { %720 = vmatmul.msk.f32.gmra.mxu0 %vm35_vm0, %v387_v15 }
 0x3a1   :  { %v251_v16 = vpop.f32.mrf.mxu0 }
 0x3a2   :  { %v257_v20 = vmul.f32 0.35355338, %v251_v16 }
 0x3a4   :  { %v259_v21 = vsel %vm134_vm1, %v257_v20, -inf }
 0x3a5   :  { %260 = vmax.xlane.f32.xlu0 %v259_v21 }
 0x3a9   :  { %v254_v22 = vpop.f32.mrf.mxu0 }
 0x3aa   :  { %v258_v28 = vmul.f32 0.35355338, %v254_v22 }
 0x3ac   :  { %v571_v23 = vpop.f32.mrf.mxu3  ;;  %v262_v35 = vsel %vm134_vm1, %v258_v28, -inf }
 0x3ad   :  { %v577_v24 = vmul.f32 0.35355338, %v571_v23 }
 0x3af   :  { %v579_v25 = vsel %vm134_vm1, %v577_v24, -inf }
 0x3b0   :  { %580 = vmax.xlane.f32.xlu1 %v579_v25 }
 0x3b1   :  { %v447_v26 = vpop.f32.mrf.mxu0 }
 0x3b2   :  { %v453_v27 = vmul.f32 0.35355338, %v447_v26 }
 0x3b4   :  { %v574_v29 = vpop.f32.mrf.mxu3  ;;  %v455_v32 = vsel %vm134_vm1, %v453_v27, -inf }
 0x3b5   :  { %v578_v33 = vmul.f32 0.35355338, %v574_v29  ;;  %456 = vmax.xlane.f32.xlu0 %v455_v32 }
 0x3b7   :  { %v582_v34 = vsel %vm134_vm1, %v578_v33, -inf }
 0x3b8   :  { %583 = vmax.xlane.f32.xlu2 %v582_v34  ;;  %263 = vmax.xlane.f32.xlu1 %v262_v35 }
 0x3b9   :  { %v450_v36 = vpop.f32.mrf.mxu0 }
 0x3ba   :  { %v454_v37 = vmul.f32 0.35355338, %v450_v36 }
 0x3bc   :  { %v458_v38 = vsel %vm134_vm1, %v454_v37, -inf }
 0x3c0   :  { %459 = vmax.xlane.f32.xlu1 %v458_v38 }
 0x418   :  { %v261_v39 = vpop.xlane.xlu0 %260 }
 0x419   :  { %v265_v40 = vsub.f32 %v257_v20, %v261_v39 }
 0x41b   :  { %v267_v41 = vmul.f32 1.442695, %v265_v40 }
 0x41d   :  { %765 = vpow2.f32 %v267_v41 }
 0x423   :  { %v967_v42 = vpop.eup %765  ;;  %v581_v43 = vpop.xlane.xlu1 %580 }
 0x424   :  { %v585_v44 = vsub.f32 %v577_v24, %v581_v43  ;;  %v271_v45 = vsel %vm134_vm1, %v967_v42, 0.0 }
 0x425   :  { %272 = vadd.xlane.f32.xlu0 %v271_v45 }
 0x426   :  { %v587_v46 = vmul.f32 1.442695, %v585_v44 }
 0x428   :  { %767 = vpow2.f32 %v587_v46  ;;  %v457_v49 = vpop.xlane.xlu0 %456 }
 0x429   :  { %v461_v55 = vsub.f32 %v453_v27, %v457_v49 }
 0x42b   :  { %v584_v47 = vpop.xlane.xlu2 %583  ;;  %v264_v48 = vpop.xlane.xlu1 %263  ;;  %v463_v57 = vmul.f32 1.442695, %v461_v55 }
 0x42c   :  { %v586_v50 = vsub.f32 %v578_v33, %v584_v47  ;;  %v266_v51 = vsub.f32 %v258_v28, %v264_v48 }
 0x42e   :  { %v971_v52 = vpop.eup %767  ;;  %v589_v53 = vmul.f32 1.442695, %v586_v50  ;;  %v269_v54 = vmul.f32 1.442695, %v266_v51 }
 0x42f   :  { %v591_v56 = vsel %vm134_vm1, %v971_v52, 0.0 }
 0x430   :  { %769 = vpow2.f32 %v589_v53  ;;  %592 = vadd.xlane.f32.xlu2 %v591_v56 }
 0x431   :  { %771 = vpow2.f32 %v269_v54 }
 0x432   :  { %773 = vpow2.f32 %v463_v57 }
 0x433   :  { %v460_v58 = vpop.xlane.xlu1 %459 }
 0x434   :  { %v462_v61 = vsub.f32 %v454_v37, %v460_v58 }
 0x436   :  { %v975_v59 = vpop.eup %769  ;;  %v465_v1 = vmul.f32 1.442695, %v462_v61 }
 0x437   :  { %v977_v60 = vpop.eup %771  ;;  %v594_v62 = vsel %vm134_vm1, %v975_v59, 0.0 }
 0x438   :  { %595 = vadd.xlane.f32.xlu2 %v594_v62  ;;  %v274_v0 = vsel %vm134_vm1, %v977_v60, 0.0  ;;  %v985_v2 = vpop.eup %773  ;;  %775 = vpow2.f32 %v465_v1 }
 0x439   :  { %275 = vadd.xlane.f32.xlu1 %v274_v0  ;;  %741 = vrot.lane.b32.xlu0 %v740_v63, %s817_s0  ;;  %v467_v3 = vsel %vm134_vm1, %v985_v2, 0.0 }
 0x43e   :  { %v990_v4 = vpop.eup %775 }
 0x43f   :  { %v470_v30 = vsel %vm134_vm1, %v990_v4, 0.0 }
 0x441   :  { %468 = vadd.xlane.f32.xlu1 %v467_v3  ;;  %751 = vrot.lane.b32.xlu0 %v740_v63, %s815_s11 }
 0x449   :  { %471 = vadd.xlane.f32.xlu1 %v470_v30 }
 0x450   :  { %746 = vrot.lane.b32.xlu2 %v890_v13, %s817_s0 }
 0x498   :  { %v273_v31 = vpop.xlane.xlu0 %272 }
 0x499   :  { %777 = vrcp.f32 %v273_v31  ;;  %v288_v20 = vand.u32 2147483648, %v273_v31  ;;  %vm282_vm12 = vweird.f32 %v273_v31  ;;  %v286_v25 = vand.u32 2147483647, %v273_v31 }
 0x49b   :  { %v289_v34 = vor.u32 1.1754944e-38, %v288_v20  ;;  %vm287_vm3 = vcmp.eq.f32.partialorder %v286_v25, 8.507059e+37 }
 0x49f   :  { %v778_v5 = vpop.eup %777 }
 0x4a0   :  { %v278_v6 = vmul.f32 %v778_v5, %v273_v31  ;;  %vm283_vm10 = vweird.f32 %v778_v5 }
 0x4a1   :  { %vm1001_vm13 = vmor %vm282_vm12, %vm283_vm10 }
 0x4a2   :  { %v279_v11 = vsub.f32 1.0, %v278_v6 }
 0x4a3   :  { %v593_v10 = vpop.xlane.xlu2 %592 }
 0x4a4   :  { %779 = vrcp.f32 %v593_v10  ;;  %v280_v15 = vmul.f32 %v778_v5, %v279_v11  ;;  %v608_v21 = vand.u32 2147483648, %v593_v10  ;;  %v606_v23 = vand.u32 2147483647, %v593_v10 }
 0x4a5   :  { %vm602_vm14 = vweird.f32 %v593_v10 }
 0x4a6   :  { %v281_v13 = vadd.f32 %v778_v5, %v280_v15  ;;  %v609_v29 = vor.u32 1.1754944e-38, %v608_v21  ;;  %vm607_vm2 = vcmp.eq.f32.partialorder %v606_v23, 8.507059e+37 }
 0x4a8   :  { %v285_v32 = vsel %vm1001_vm13, %v778_v5, %v281_v13 }
 0x4a9   :  { %v290_v43 = vsel %vm287_vm3, %v289_v34, %v285_v32 }
 0x4aa   :  { %v780_v14 = vpop.eup %779  ;;  %v291_v55 = vmul.f32 %v967_v42, %v290_v43 }
 0x4ab   :  { %v598_v17 = vmul.f32 %v780_v14, %v593_v10  ;;  %v995_v18 = vpop.xlane.xlu2 %595  ;;  %v742_v19 = vpop.permute.xlu0 %741  ;;  %vm603_vm11 = vweird.f32 %v780_v14 }
 0x4ac   :  { %781 = vrcp.f32 %v995_v18  ;;  %v998_v12 = vpop.xlane.xlu1 %275  ;;  %v743_v16 = vunpack.i.l.bf16 %v742_v19  ;;  %v744_v24 = vunpack.i.h.bf16 %v742_v19  ;;  %vm604_vm15 = vmor %vm602_vm14, %vm603_vm11  ;;  %v623_v44 = vand.u32 2147483648, %v995_v18 }
 0x4ad   :  { %v599_v9 = vsub.f32 1.0, %v598_v17  ;;  %783 = vrcp.f32 %v998_v12  ;;  %v303_v49 = vand.u32 2147483648, %v998_v12  ;;  %v621_v51 = vand.u32 2147483647, %v995_v18 }
 0x4ae   :  { %653 = vmatpush.msra.mxu2 %v743_v16  ;;  %vm617_vm6 = vweird.f32 %v995_v18  ;;  %v624_v57 = vor.u32 1.1754944e-38, %v623_v44  ;;  %vm297_vm7 = vweird.f32 %v998_v12 }
 0x4af   :  { %v600_v22 = vmul.f32 %v780_v14, %v599_v9  ;;  %v304_v63 = vor.u32 1.1754944e-38, %v303_v49  ;;  %vm622_vm9 = vcmp.eq.f32.partialorder %v621_v51, 8.507059e+37 }
 0x4b0   :  { %654 = vmatpush.msra.mxu2 %v744_v24 }
 0x4b1   :  { %v601_v27 = vadd.f32 %v780_v14, %v600_v22 }
 0x4b2   :  { %v782_v28 = vpop.eup %781 }
 0x4b3   :  { %v784_v33 = vpop.eup %783  ;;  %v605_v35 = vsel %vm604_vm15, %v780_v14, %v601_v27  ;;  %v613_v36 = vmul.f32 %v782_v28, %v995_v18  ;;  %v747_v37 = vpop.permute.xlu2 %746  ;;  %vm618_vm4 = vweird.f32 %v782_v28 }
 0x4b4   :  { %v610_v38 = vsel %vm607_vm2, %v609_v29, %v605_v35  ;;  %v293_v39 = vmul.f32 %v784_v33, %v998_v12  ;;  %v469_v40 = vpop.xlane.xlu1 %468  ;;  %v748_v46 = vunpack.i.l.bf16 %v747_v37  ;;  %v752_v50 = vpop.permute.xlu0 %751  ;;  %v749_v54 = vunpack.i.h.bf16 %v747_v37  ;;  %vm619_vm8 = vmor %vm617_vm6, %vm618_vm4 }
 0x4b5   :  { %v614_v41 = vsub.f32 1.0, %v613_v36  ;;  %785 = vrcp.f32 %v469_v40  ;;  %v611_v47 = vmul.f32 %v971_v52, %v610_v38  ;;  %vm298_vm5 = vweird.f32 %v784_v33 }
 0x4b6   :  { %v294_v45 = vsub.f32 1.0, %v293_v39  ;;  %333 = vmatpush.msrb.mxu1 %v748_v46  ;;  %v301_v52 = vand.u32 2147483647, %v998_v12  ;;  %v753_v58 = vunpack.i.l.bf16 %v752_v50  ;;  %vm299_vm10 = vmor %vm297_vm7, %vm298_vm5  ;;  %v754_v42 = vunpack.i.h.bf16 %v752_v50 }
 0x4b7   :  { %v615_v48 = vmul.f32 %v782_v28, %v614_v41  ;;  %727 = vmatmul.msk.f32.vlgmr.msra.gmra.mxu2 %vm134_vm1, %v611_v47  ;;  %v484_v14 = vand.u32 2147483648, %v469_v40  ;;  %v482_v15 = vand.u32 2147483647, %v469_v40  ;;  %vm478_vm13 = vweird.f32 %v469_v40 }
 0x4b8   :  { %v295_v53 = vmul.f32 %v784_v33, %v294_v45  ;;  %334 = vmatpush.msrb.mxu1 %v749_v54  ;;  %vm302_vm11 = vcmp.eq.f32.partialorder %v301_v52, 8.507059e+37 }
 0x4b9   :  { %v616_v56 = vadd.f32 %v782_v28, %v615_v48  ;;  %707 = vmatmul.msk.f32.vlgmr.msrb.gmra.mxu1 %vm134_vm1, %v291_v55  ;;  %vm483_vm15 = vcmp.eq.f32.partialorder %v482_v15, 8.507059e+37 }
 0x4ba   :  { %v296_v61 = vadd.f32 %v784_v33, %v295_v53  ;;  %529 = vmatpush.msra.mxu1 %v753_v58 }
 0x4bb   :  { %v786_v62 = vpop.eup %785  ;;  %v620_v0 = vsel %vm619_vm8, %v782_v28, %v616_v56 }
 0x4bc   :  { %v474_v1 = vmul.f32 %v786_v62, %v469_v40  ;;  %v472_v3 = vpop.xlane.xlu1 %471  ;;  %v625_v30 = vsel %vm622_vm9, %v624_v57, %v620_v0  ;;  %v300_v31 = vsel %vm299_vm10, %v784_v33, %v296_v61  ;;  %530 = vmatpush.msra.mxu1 %v754_v42  ;;  %vm479_vm12 = vweird.f32 %v786_v62 }
 0x4bd   :  { %787 = vrcp.f32 %v472_v3  ;;  %v626_v5 = vmul.f32 %v975_v59, %v625_v30  ;;  %v305_v10 = vsel %vm302_vm11, %v304_v63, %v300_v31  ;;  %vm480_vm14 = vmor %vm478_vm13, %vm479_vm12  ;;  %v485_v59 = vor.u32 1.1754944e-38, %v484_v14 }
 0x4be   :  { %v475_v6 = vsub.f32 1.0, %v474_v1  ;;  %v306_v17 = vmul.f32 %v977_v60, %v305_v10  ;;  %v499_v21 = vand.u32 2147483648, %v472_v3  ;;  %v497_v23 = vand.u32 2147483647, %v472_v3 }
 0x4bf   :  { %728 = vmatmul.msk.f32.gmra.mxu2 %vm134_vm1, %v626_v5  ;;  %vm493_vm3 = vweird.f32 %v472_v3 }
 0x4c0   :  { %v476_v11 = vmul.f32 %v786_v62, %v475_v6  ;;  %v500_v24 = vor.u32 1.1754944e-38, %v499_v21  ;;  %vm498_vm5 = vcmp.eq.f32.partialorder %v497_v23, 8.507059e+37 }
 0x4c1   :  { %708 = vmatmul.msk.f32.gmra.mxu1 %vm134_vm1, %v306_v17 }
 0x4c2   :  { %v477_v18 = vadd.f32 %v786_v62, %v476_v11 }
 0x4c3   :  { %v788_v19 = vpop.eup %787 }
 0x4c4   :  { %v481_v12 = vsel %vm480_vm14, %v786_v62, %v477_v18  ;;  %v489_v9 = vmul.f32 %v788_v19, %v472_v3  ;;  %vm494_vm2 = vweird.f32 %v788_v19 }
 0x4c5   :  { %v486_v16 = vsel %vm483_vm15, %v485_v59, %v481_v12  ;;  %vm495_vm4 = vmor %vm493_vm3, %vm494_vm2 }
 0x4c6   :  { %v490_v13 = vsub.f32 1.0, %v489_v9  ;;  %v487_v22 = vmul.f32 %v985_v2, %v486_v16 }
 0x4c8   :  { %v491_v20 = vmul.f32 %v788_v19, %v490_v13 }
 0x4c9   :  { %721 = vmatmul.msk.f32.vlgmr.msra.gmra.mxu1 %vm134_vm1, %v487_v22 }
 0x4ca   :  { %v492_v60 = vadd.f32 %v788_v19, %v491_v20 }
 0x4cc   :  { %v496_v25 = vsel %vm495_vm4, %v788_v19, %v492_v60 }
 0x4cd   :  { %v501_v26 = vsel %vm498_vm5, %v500_v24, %v496_v25 }
 0x4ce   :  { %v502_v27 = vmul.f32 %v990_v4, %v501_v26 }
 0x4d1   :  { %722 = vmatmul.msk.f32.gmra.mxu1 %vm134_vm1, %v502_v27 }
 0x536   :  { %v336_v28 = vpop.f32.mrf.mxu1 }
 0x537   :  { %344 = vrot.lane.b32.xlu1 %v336_v28, %s818_s18 }
 0x53a   :  { %v656_v29 = vpop.f32.mrf.mxu2 }
 0x53b   :  { %664 = vrot.lane.b32.xlu0 %v656_v29, %s818_s18 }
 0x53e   :  { %v339_v2 = vpop.f32.mrf.mxu1 }
 0x53f   :  { %346 = vrot.lane.b32.xlu2 %v339_v2, %s818_s18 }
 0x542   :  { %v659_v32 = vpop.f32.mrf.mxu2 }
 0x546   :  { %v532_v33 = vpop.f32.mrf.mxu1 }
 0x547   :  { %666 = vrot.lane.b32.xlu2 %v659_v32, %s818_s18 }
 0x54e   :  { %v535_v35 = vpop.f32.mrf.mxu1 }
 0x599   :  { %v347_v34 = vpop.permute.xlu2 %346 }
 0x59a   :  { %v351_v4 = vsel %vm35_vm0, %v940_v8, %v347_v34 }
 0x59b   :  { %353 = vst.msk [vmem:[#allocation2 + $0x8] sm:$0xff] %vm134_vm1, %v351_v4 }
 0x5a1   :  { %v667_v36 = vpop.permute.xlu2 %666 }
 0x5a2   :  { %v671_v37 = vsel %vm35_vm0, %v535_v35, %v667_v36 }
 0x5a3   :  { %674 = vst.msk [vmem:[#allocation2 + $0x18] sm:$0xff] %vm134_vm1, %v671_v37 }
 0x5a9   :  { %v345_v38 = vpop.permute.xlu1 %344 }
 0x5aa   :  { %v350_v39 = vsel %vm35_vm0, %v938_v7, %v345_v38 }
 0x5ab   :  { %352 = vst.msk [vmem:[#allocation2] sm:$0xff] %vm134_vm1, %v350_v39 }
 0x5ad   :  { %v665_v8 = vpop.permute.xlu0 %664 }
 0x5ae   :  { %v670_v40 = vsel %vm35_vm0, %v532_v33, %v665_v8 }
 0x5af   :  { %673 = vst.msk [vmem:[#allocation2 + $0x10] sm:$0xff] %vm134_vm1, %v670_v40 }
 0x5b0   :  { %687 = dma.vmem_to_hbm [thread:$0]  %s680_s23, 512, %s682_s21, [#allocation3], %s820_s24, %s820_s24, %s818_s18  }
 0x5b1   :  { %813 = dma.done.wait [#allocation3], 512  }
 0x5b2   :  { %814 = vsyncadd [#allocation3], 4294966784 }
 0x5b3   :  { %692 = vsyncpa [#allocation3], 1 }

</bundles_post_ra>
